<compile_context>
chip_gen: v6e
topology: v6e:2x2x1
jax: 0.10.0
libtpu: 0.0.40
codegen_flags: <defaults>
</compile_context>

<pallas_src>
import jax
import jax.numpy as jnp
from jax.experimental import pallas as pl
from jax.experimental.pallas import tpu as pltpu


def _add_prompt_kernel(x_ref, p_ref, o_ref):
    # x_ref / p_ref / o_ref : (TR, L) — one lane-dense slab of the flattened
    # (C*H*W) image.  Single full-tile load + add + store per grid step.
    o_ref[...] = x_ref[...] + p_ref[...]


def _lane_dense_split(c, h, w, max_lane=2048):
    """Split the flat per-image length C*H*W into (rows, lanes).

    Prefers lanes that are a multiple of 128 (unmasked lane-dense stores) and
    at most `max_lane`.  If C*H*W is not 128-aligned, fall back to (C*H, W)
    so block sizes stay bounded (lanes may then be masked — unavoidable)."""
    f = c * h * w
    if f % 128 != 0:
        return c * h, w
    k = f // 128
    for cand in range(min(max_lane // 128, k), 0, -1):
        if k % cand == 0:
            return f // (128 * cand), 128 * cand
    return k, 128


def _row_tile(rows, lanes, itemsize, max_block_bytes=2 * 1024 * 1024):
    """Largest row tile (multiple of 8 sublanes) whose block fits the budget,
    or the full row extent when the whole image slab fits."""
    bytes_per_row = lanes * itemsize
    if rows * bytes_per_row <= max_block_bytes:
        return rows
    tr = max_block_bytes // bytes_per_row
    tr = max(8, (tr // 8) * 8)
    return min(tr, rows)


def pad_prompter_forward(x, pad_up, pad_down, pad_left, pad_right):
    """Equivalent of PadPrompter.forward: x + tile(prompt, (N, 1, 1, 1))."""
    n, c, h, w = x.shape
    p = pad_up.shape[2]
    m = h - 2 * p
    assert pad_up.shape == (1, c, p, w) and pad_down.shape == (1, c, p, w)
    assert pad_left.shape == (1, c, m, p) and pad_right.shape == (1, c, m, p)

    # Precompute the (1, C, H, W) prompt plane once (parameter-sized work).
    mid = jnp.zeros((1, c, m, m), pad_left.dtype)
    prompt = jnp.concatenate([pad_left, mid, pad_right], axis=3)
    prompt = jnp.concatenate([pad_up, prompt, pad_down], axis=2)
    prompt = prompt.astype(x.dtype)

    # Flatten trailing dims into a lane-dense (rows, lanes) slab per image.
    rows, lanes = _lane_dense_split(c, h, w)
    x3 = x.reshape(n, rows, lanes)
    p3 = prompt.reshape(1, rows, lanes)

    tr = _row_tile(rows, lanes, jnp.dtype(x.dtype).itemsize)
    nr = pl.cdiv(rows, tr)

    out3 = pl.pallas_call(
        _add_prompt_kernel,
        out_shape=jax.ShapeDtypeStruct((n, rows, lanes), x.dtype),
        grid=(nr, n),  # batch innermost -> prompt block stays VMEM-resident
        in_specs=[
            # x: one (tr, lanes) slab per (row-tile, batch) step.
            pl.BlockSpec((None, tr, lanes), lambda r, b: (b, r, 0)),
            # prompt: batch-invariant, indexed by the row tile only (no
            # re-fetch across the inner batch loop).
            pl.BlockSpec((None, tr, lanes), lambda r, b: (0, r, 0)),
        ],
        out_specs=pl.BlockSpec((None, tr, lanes), lambda r, b: (b, r, 0)),
        compiler_params=pltpu.CompilerParams(
            dimension_semantics=("parallel", "parallel")),
    )(x3, p3)

    return out3.reshape(n, c, h, w)


if __name__ == "__main__":
    # Small shapes consistent with the module: image_size=16, prompt_size=4,
    # 3 channels (hard-coded by the PyTorch parameters).
    N, C, IMAGE, PAD = 2, 3, 16, 4
    MID = IMAGE - 2 * PAD

    key = jax.random.PRNGKey(0)
    k_up, k_down, k_left, k_right, k_x = jax.random.split(key, 5)

    # Deterministic "randn" parameter init (same shapes as the nn.Parameters).
    pad_up = jax.random.normal(k_up, (1, C, PAD, IMAGE), jnp.float32)
    pad_down = jax.random.normal(k_down, (1, C, PAD, IMAGE), jnp.float32)
    pad_left = jax.random.normal(k_left, (1, C, MID, PAD), jnp.float32)
    pad_right = jax.random.normal(k_right, (1, C, MID, PAD), jnp.float32)
    x = jax.random.normal(k_x, (N, C, IMAGE, IMAGE), jnp.float32)

    out = jax.block_until_ready(
        pad_prompter_forward(x, pad_up, pad_down, pad_left, pad_right))

    # Pure-JAX reference mirroring the PyTorch forward exactly.
    ref_prompt = jnp.concatenate(
        [pad_left, jnp.zeros((1, C, MID, MID), jnp.float32), pad_right], axis=3)
    ref_prompt = jnp.concatenate([pad_up, ref_prompt, pad_down], axis=2)
    ref = x + jnp.tile(ref_prompt, (N, 1, 1, 1))

    assert out.shape == (N, C, IMAGE, IMAGE)
    assert out.dtype == x.dtype
    assert jnp.allclose(out, ref, atol=1e-6, rtol=1e-6)
    print("KERNEL_OK")
</pallas_src>

<mosaic_0001>
module attributes {stable_mosaic.version = 11 : i64} {
  func.func @_add_prompt_kernel(%arg0: i32, %arg1: i32, %arg2: memref<1x1x768xf32, #tpu.memory_space<vmem>>, %arg3: memref<1x1x768xf32, #tpu.memory_space<vmem>>, %arg4: memref<1x1x768xf32, #tpu.memory_space<vmem>>) attributes {dimension_semantics = [#tpu.dimension_semantics<parallel>, #tpu.dimension_semantics<parallel>], iteration_bounds = array<i64: 1, 2>, scalar_prefetch = 0 : i64, scratch_operands = 0 : i64, tpu.core_type = #tpu.core_type<tc>, window_params = [{transform_indices = @transform_0, window_bounds = array<i64: 1, 1, 768>}, {transform_indices = @transform_1, window_bounds = array<i64: 1, 1, 768>}, {transform_indices = @transform_2, window_bounds = array<i64: 1, 1, 768>}]} {
    %c0 = arith.constant 0 : index
    %c0_0 = arith.constant 0 : index
    %c0_1 = arith.constant 0 : index
    %0 = vector.load %arg2[%c0, %c0_0, %c0_1] : memref<1x1x768xf32, #tpu.memory_space<vmem>>, vector<1x1x768xf32>
    %1 = vector.shape_cast %0 : vector<1x1x768xf32> to vector<1x768xf32>
    %c0_2 = arith.constant 0 : index
    %c0_3 = arith.constant 0 : index
    %c0_4 = arith.constant 0 : index
    %2 = vector.load %arg3[%c0_2, %c0_3, %c0_4] : memref<1x1x768xf32, #tpu.memory_space<vmem>>, vector<1x1x768xf32>
    %3 = vector.shape_cast %2 : vector<1x1x768xf32> to vector<1x768xf32>
    %4 = arith.addf %1, %3 : vector<1x768xf32>
    %c0_5 = arith.constant 0 : index
    %c0_6 = arith.constant 0 : index
    %c0_7 = arith.constant 0 : index
    %5 = vector.load %arg4[%c0_5, %c0_6, %c0_7] : memref<1x1x768xf32, #tpu.memory_space<vmem>>, vector<1x1x768xf32>
    %6 = vector.shape_cast %5 : vector<1x1x768xf32> to vector<1x768xf32>
    %7 = vector.shape_cast %4 : vector<1x768xf32> to vector<1x1x768xf32>
    tpu.vector_store %arg4[%c0_5, %c0_6, %c0_7], %7 {strides = array<i32>} : memref<1x1x768xf32, #tpu.memory_space<vmem>>, vector<1x1x768xf32>,
    return
  }
  func.func @transform_0(%arg0: i32, %arg1: i32) -> (i32, i32, i32) {
    %c0_i32 = arith.constant 0 : i32
    %c0_i32_0 = arith.constant 0 : i32
    return %arg1, %arg0, %c0_i32 : i32, i32, i32
  }
  func.func @transform_1(%arg0: i32, %arg1: i32) -> (i32, i32, i32) {
    %c0_i32 = arith.constant 0 : i32
    %c0_i32_0 = arith.constant 0 : i32
    %c0_i32_1 = arith.constant 0 : i32
    return %c0_i32, %arg0, %c0_i32_0 : i32, i32, i32
  }
  func.func @transform_2(%arg0: i32, %arg1: i32) -> (i32, i32, i32) {
    %c0_i32 = arith.constant 0 : i32
    %c0_i32_0 = arith.constant 0 : i32
    return %arg1, %arg0, %c0_i32 : i32, i32, i32
  }
}

</mosaic_0001>

<bundles_post_ra>
// kernel: tpu_custom_call.1
= control target key start
LH: loop header
LB: loop body
LE: loop exit
PB: predicated region body
PF: predicated region fallthrough
CT: control target
= control target key end

     0   :  { %7 = vsyncpa [#allocation3], 0  ;;  %s727_s0 = inlined_call_operand.hbm [shape: f32[2,1,768], index: 0, kind: input, shape index: {}]   ;;  %s728_s1 = inlined_call_operand.hbm [shape: f32[1,1,768], index: 1, kind: input, shape index: {}]   ;;  %s729_s2 = inlined_call_operand.hbm [shape: f32[2,1,768], index: 2, kind: output, shape index: {}]  }
   0x1   :  { %9 = vsyncpa [#allocation3 + $0x1], 0 }
   0x2   :  { %10 = vsyncpa [#allocation6], 0 }
   0x3   :  { %11 = vsyncpa [#allocation4], 0 }
   0x4   :  { %13 = vsyncpa [#allocation4 + $0x1], 0  ;;  %s566_s9 = smov 0   ;;  %s568_s10 = smov 0  }
   0x5   :  { %s570_s11 = smov 0   ;;  %s572_s12 = smov 0  }
   0x6   :  { %s574_s13 = smov 0   ;;  %s576_s14 = smov 0  }
   0x7 LB: > { %s320_s15 = sadd.s32 4294967295, %s546_s14   ;;  %s321_s16 = sadd.s32 4294967294, %s546_s14   ;;  %s546_s14 = sphi %s576_s14, %s19_s14   ;;  %s542_s13 = sphi %s574_s13, %s746_s13   ;;  %s538_s12 = sphi %s572_s12, %s745_s12   ;;  %s534_s11 = sphi %s570_s11, %s744_s11   ;;  %s530_s10 = sphi %s568_s10, %s743_s10   ;;  %s526_s9 = sphi %s566_s9, %s742_s9  }
   0x8   : > { %p53_p0 = scmp.ne.s32.totalorder %s530_s10, %s526_s9  ;;  %p600_p1 = scmp.eq.s32.totalorder %s320_s15, 0 }
   0x9   : > { %p604_p2 = scmp.eq.s32.totalorder %s320_s15, 1  ;;  %p111_p3 = scmp.eq.s32.totalorder %s321_s16, 1 }
   0xa   : > { %p610_p4 = por %p600_p1, %p53_p0  ;;  %p322_p5 = scmp.ge.s32.totalorder %s546_s14, 1 }
   0xb   : > { %p615_p6 = por %p111_p3, %p53_p0  ;;  %p118_p7 = scmp.lt.s32.totalorder %s546_s14, 3 }
   0xc   : > { %s733_s19 = scalar_select %p610_p4, 1, 0 }
   0xd   : > { %s734_s20 = scalar_select %p615_p6, 1, 0 }
   0xe   : > { %p620_p8 = pnand %p322_p5, %p118_p7  ;;  %s548_s22 = smov [#allocation5]  }
   0xf   : > { %s134_s23 = sshll.u32 %s548_s22, 4  ;;  %s28_s25 = sadd.s32 1, %s542_s13  ;;  %s135_s23 = int_to_ptr.vmem [resolvable:$true] %s134_s23 }
  0x10   : > { %p343_p10 = pneg %p620_p8  ;;  %s40_s26 = sadd.s32 1, %s534_s11 }
  0x11   : > { %p29_p12 = scmp.ge.s32.totalorder %s28_s25, 2  ;;  %s419_s27 = scalar_lea.vmem %s135_s23, 96 }
  0x12   : > { %p629_p11 = pnand %p343_p10, %p600_p1  ;;  %p420_p0 = scmp.ne.s32.totalorder %s135_s23, %s419_s27 }
  0x13   : > { %p427_p7 = scmp.lt.s32.totalorder %s135_s23, %s135_s23  ;;  %p428_p6 = scmp.lt.s32.totalorder %s419_s27, %s419_s27 }
  0x14   : > { %p410_p13 = pneg %p629_p11 }
  0x15   : > { %p429_p9 = por %p428_p6, %p427_p7 }
  0x16   : > { %p422_p3 = pnand %p420_p0, %p410_p13 }
  0x18   : > { %p423_p5 = pneg %p422_p3 }
  0x1a   : > { %p430_p4 = pnand %p429_p9, %p423_p5 }
  0x1c   : > { %433 = shalt.err (!%p430_p4)
}
  0x1d   : > { %346 = dma.hbm_to_vmem [thread:$0]  (!%p629_p11), %s728_s1, 96, %s135_s23, [#allocation6]  }
  0x1e   : > { %s748_s25 = smov (%p29_p12, %s28_s25), 0  ;;  %p47_p6 = scmp.ne.s32.totalorder %s534_s11, %s530_s10 }
  0x1f   : > { %p48_p4 = scmp.eq.s32.totalorder %s546_s14, 0  ;;  %s35_s30 = ssub.s32 %s542_s13, %s748_s25 }
  0x20   : > { %p356_p9 = scmp.lt.s32.totalorder %s546_s14, 2  ;;  %p38_p10 = scmp.eq.s32.totalorder %s35_s30, 0 }
  0x21   : > { %p49_p13 = por %p48_p4, %p47_p6  ;;  %p652_p0 = por %p604_p2, %p47_p6 }
  0x22   : > { %s145_s4 = sand.u32 1, %s534_s11   ;;  %s332_s7 = smul.u32 96, %s542_s13 }
  0x23   : > { %s658_s5 = scalar_select %p38_p10, %s534_s11, %s40_s26  }
  0x24   : > { %s331_s6 = smul.u32 6, %s145_s4  ;;  %p661_p11 = pnand %p356_p9, %p49_p13 }
  0x25   : > { %s157_s22 = scalar_lea.hbm %s727_s0, %s332_s7  ;;  %s146_s24 = scalar_lea.sflag [#allocation3], %s145_s4 }
  0x26   : > { %s149_s23 = scalar_lea.vmem [#allocation2], %s331_s6  ;;  %p436_p2 = pneg %p661_p11 }
  0x27   : > { %s159_s18 = sshll.u32 %s149_s23, 4  ;;  %s549_s26 = smov [#allocation2]   ;;  %s160_s18 = int_to_ptr.vmem [resolvable:$true] %s159_s18 }
  0x28   : > { %s447_s27 = scalar_lea.vmem %s160_s18, 96  ;;  %s452_s28 = sshll.u32 %s549_s26, 4  ;;  %s453_s28 = int_to_ptr.vmem [resolvable:$false] %s452_s28 }
  0x29   : > { %p448_p12 = scmp.ne.s32.totalorder %s160_s18, %s447_s27  ;;  %s454_s29 = scalar_lea.vmem %s453_s28, 192 }
  0x2a   : > { %p455_p7 = scmp.lt.s32.totalorder %s160_s18, %s453_s28  ;;  %p456_p6 = scmp.lt.s32.totalorder %s454_s29, %s447_s27 }
  0x2b   : > { %p450_p3 = pnand %p448_p12, %p436_p2 }
  0x2c   : > { %p457_p4 = por %p456_p6, %p455_p7 }
  0x2d   : > { %p451_p5 = pneg %p450_p3 }
  0x2f   : > { %p458_p9 = pnand %p457_p4, %p451_p5 }
  0x31   : > { %461 = shalt.err (!%p458_p9)
}
  0x32   : > { %350 = dma.hbm_to_vmem [thread:$0]  (!%p661_p11), %s157_s22, 96, %s160_s18, %s146_s24  }
  0x33   : > { %168 = sbr.rel (%p620_p8) target bundleno = 83 (0x53), region = 28  ;;  %s675_s30 = sand.u32 (!%p620_p8), 1, %s530_s10  }
  0x34   : > { %s333_s4 = smul.u32 (!%p620_p8), 6, %s675_s30  ;;  %s171_s6 = scalar_lea.sflag (!%p620_p8), [#allocation3], %s675_s30 }
  0x35   : > { %p739_p10 = scmp.ne.s32.totalorder (!%p620_p8), %s733_s19, 0 }
  0x36   : > { %s174_s7 = scalar_lea.vmem (!%p620_p8), [#allocation2], %s333_s4 }
  0x38   : > { %513 = dma.done.wait (%p739_p10), %s171_s6, 96  }
  0x39   : > { %515 = vsyncadd (%p739_p10), %s171_s6, 4294967200 }
  0x3a   : > { %517 = dma.done.wait (%p600_p1), [#allocation6], 96  }
  0x3b   : > { %519 = vsyncadd (%p600_p1), [#allocation6], 4294967200  ;;  %v202_v0 = vlaneseq  ;;  %s334_s21 = smul.u32 96, %s538_s12  ;;  %s198_s8 = scalar_lea.vmem [#allocation7], %s333_s4  ;;  %v199_v1 = vld [vmem:[%s174_s7] sm:$0x3f] }
  0x3c   : > { %s224_s15 = sshll.u32 %s198_s8, 4  ;;  %v200_v2 = vld [vmem:[#allocation5] sm:$0x3f]  ;;  %s208_s23 = scalar_lea.sflag [#allocation4], %s675_s30  ;;  %s225_s15 = int_to_ptr.vmem [resolvable:$true] %s224_s15 }
  0x3d   : > { %vm204_vm0 = vcmp.lt.s32.totalorder %v202_v0, 768  ;;  %v201_v3 = vadd.f32 %v200_v2, %v199_v1  ;;  %s222_s22 = scalar_lea.hbm %s729_s2, %s334_s21  ;;  %s462_s17 = scalar_lea.vmem %s225_s15, 96 }
  0x3e   : > { %p463_p1 = scmp.ne.s32.totalorder %s225_s15, %s462_s17  ;;  %s550_s18 = smov [#allocation7]  }
  0x3f   : > { %206 = vst.msk [vmem:[%s198_s8] sm:$0x3f] %vm204_vm0, %v201_v3  ;;  %s466_s12 = sshll.u32 %s550_s18, 4  ;;  %s467_s12 = int_to_ptr.vmem [resolvable:$false] %s466_s12 }
  0x40   : > { %p464_p8 = pnand %p463_p1, %p652_p0  ;;  %s468_s24 = scalar_lea.vmem %s467_s12, 192 }
  0x41   : > { %p469_p11 = scmp.lt.s32.totalorder %s225_s15, %s467_s12  ;;  %p470_p2 = scmp.lt.s32.totalorder %s468_s24, %s462_s17 }
  0x42   : > { %p465_p13 = pneg %p464_p8 }
  0x43   : > { %p471_p12 = por %p470_p2, %p469_p11 }
  0x45   : > { %p472_p3 = pnand %p471_p12, %p465_p13 }
  0x47   : > { %475 = shalt.err (!%p472_p3)
}
  0x48   : > { %s476_s27 = scalar_lea.hbm %s222_s22, 96  ;;  %s480_s29 = scalar_lea.hbm %s729_s2, 192 }
  0x49   : > { %p477_p5 = scmp.ne.s32.totalorder %s222_s22, %s476_s27  ;;  %p481_p4 = scmp.lt.s32.totalorder %s222_s22, %s729_s2 }
  0x4a   : > { %p482_p9 = scmp.lt.s32.totalorder %s480_s29, %s476_s27 }
  0x4b   : > { %p478_p7 = pnand %p477_p5, %p652_p0 }
  0x4c   : > { %p483_p10 = por %p482_p9, %p481_p4 }
  0x4d   : > { %p479_p6 = pneg %p478_p7 }
  0x4f   : > { %p484_p1 = pnand %p483_p10, %p479_p6 }
  0x51   : > { %487 = shalt.err (!%p484_p1)
}
  0x52   : > { %341 = dma.vmem_to_hbm [thread:$0]  (%p652_p0), %s225_s15, 96, %s222_s22, %s208_s23  }
  0x53 PF: > { %s236_s6 = sand.u32 1, %s526_s9   ;;  %p740_p8 = scmp.ne.s32.totalorder %s734_s20, 0 }
  0x54   : > { %p741_p13 = scmp.ge.s32.totalorder %s546_s14, 2  ;;  %s237_s7 = scalar_lea.sflag [#allocation4], %s236_s6 }
  0x56   : > { %p352_p11 = pnand %p741_p13, %p740_p8 }
  0x58   : > { %p353_p2 = pneg %p352_p11 }
  0x5a   : > { %521 = dma.done.wait (%p353_p2), %s237_s7, 96  }
  0x5b   : > { %523 = vsyncadd (%p353_p2), %s237_s7, 4294967200  ;;  %s19_s14 = sadd.s32 1, %s546_s14   ;;  %s742_s9 = smov %s530_s10 }
  0x5c   : > { %p16_p12 = scmp.ge.s32.totalorder %s19_s14, 4   ;;  %s743_s10 = smov %s534_s11 }
  0x5d   : > { %s744_s11 = smov %s658_s5  ;;  %s745_s12 = smov %s542_s13 }
  0x5e   : > { %s746_s13 = smov %s748_s25  ;;  %18 = sbr.rel (!%p16_p12) target bundleno = 7 (0x7), region = 78 }
  0x63   :  { %242 = vsyncpa [#allocation3], 1 }
  0x64   :  { %244 = vsyncpa [#allocation3 + $0x1], 1 }
  0x65   :  { %245 = vsyncpa [#allocation6], 1 }
  0x66   :  { %246 = vsyncpa [#allocation4], 1 }
  0x67   :  { %248 = vsyncpa [#allocation4 + $0x1], 1 }

</bundles_post_ra>
